<compile_context>
chip_gen: v7x
topology: tpu7x:2x2x1
jax: 0.10.0
libtpu: 0.0.40
codegen_flags: <defaults>
</compile_context>

<pallas_src>
import math
import functools

import jax
import jax.numpy as jnp
from jax.experimental import pallas as pl
from jax.experimental.pallas import tpu as pltpu


_INV_SQRT2 = 1.0 / math.sqrt(2.0)
_MIB = 1024 * 1024


def _gelu(x, approximate=False):
    if approximate:
        # tanh-approx GELU: tanh lowers to the EUP (separate bundle slot),
        # freeing VALU slots when compute-bound.  Changes numerics slightly.
        c = math.sqrt(2.0 / math.pi)
        return 0.5 * x * (1.0 + jnp.tanh(c * (x + 0.044715 * x * x * x)))
    # PyTorch nn.GELU() default: exact erf-based GELU, computed in f32.
    return 0.5 * x * (1.0 + jax.lax.erf(x * _INV_SQRT2))


# --------------------------------------------------------------------------
# Kernels
# --------------------------------------------------------------------------
def _mlp_kernel_accum_out(x_ref, w1_ref, b1_ref, w2_ref, b2_ref, o_ref, *,
                          approximate):
    # f32 output: o_ref's block index is constant over the h axis, so the block
    # stays VMEM-resident across the reduction -> accumulate into it directly
    # (saves tile_n*D*4 bytes of scratch and the final copy-out).
    h_idx = pl.program_id(1)

    @pl.when(h_idx == 0)
    def _():
        o_ref[...] = jnp.zeros_like(o_ref)

    # First matmul at native operand dtype; MXU accumulates in f32.
    h = jnp.dot(x_ref[...], w1_ref[...], preferred_element_type=jnp.float32)
    h = _gelu(h + b1_ref[...].astype(jnp.float32), approximate)

    # Second matmul: activation cast back to the weight dtype (bf16 stays bf16,
    # f32 is a no-op); accumulate the partial (tile_n, D) product in f32.
    o_ref[...] += jnp.dot(h.astype(w2_ref.dtype), w2_ref[...],
                          preferred_element_type=jnp.float32)

    @pl.when(h_idx == pl.num_programs(1) - 1)
    def _():
        o_ref[...] = o_ref[...] + b2_ref[...].astype(jnp.float32)


def _mlp_kernel_scratch(x_ref, w1_ref, b1_ref, w2_ref, b2_ref, o_ref, acc_ref,
                        *, approximate):
    # Non-f32 output: accumulate in an f32 VMEM scratch, cast once at the end.
    h_idx = pl.program_id(1)

    @pl.when(h_idx == 0)
    def _():
        acc_ref[...] = jnp.zeros_like(acc_ref)

    h = jnp.dot(x_ref[...], w1_ref[...], preferred_element_type=jnp.float32)
    h = _gelu(h + b1_ref[...].astype(jnp.float32), approximate)
    acc_ref[...] += jnp.dot(h.astype(w2_ref.dtype), w2_ref[...],
                            preferred_element_type=jnp.float32)

    @pl.when(h_idx == pl.num_programs(1) - 1)
    def _():
        o_ref[...] = (acc_ref[...] + b2_ref[...].astype(jnp.float32)
                      ).astype(o_ref.dtype)


# --------------------------------------------------------------------------
# Generation-aware tile selection
# --------------------------------------------------------------------------
def _round_up(x, m):
    return (x + m - 1) // m * m


def _round_down(x, m):
    return max(m, x // m * m)


def _chip_profile():
    """Returns (generation_tag, vmem_capacity_bytes, tensorcores_per_chip)."""
    kind = ""
    try:
        kind = jax.devices()[0].device_kind.lower()
    except Exception:
        pass
    vmem = None
    try:
        vmem = int(pltpu.get_tpu_info().vmem_capacity_bytes)
    except Exception:
        vmem = None

    if "7" in kind:
        gen = "v7x"
    elif "v6" in kind:
        gen = "v6e"
    elif "v5 lite" in kind or "v5e" in kind or "v5lite" in kind:
        gen = "v5e"
    else:
        gen = "unknown"

    if vmem is None:
        vmem = {"v7x": 64 * _MIB, "v6e": 128 * _MIB,
                "v5e": 128 * _MIB}.get(gen, 64 * _MIB)
    cores = 2 if gen == "v7x" else 1
    return gen, vmem, cores


def _select_tiles(n, d, hidden, x_it, w_it, b_it, out_it, use_scratch):
    gen, vmem, n_cores = _chip_profile()

    # Row-tile targets from the roofline review:
    #   v6e  ~1024 rows -> 2*tile_n/itemsize fl/B clears the ~650 fl/B crossover
    #   v7x  ~512  rows -> clears ~310 fl/B with tighter 64 MiB VMEM
    #   v5e  256 rows is already hidden under the 4-5x slower MXU
    tn_target = {"v5e": 256, "v6e": 1024, "v7x": 512}.get(gen, 512)
    th_target = 512

    # Working-set budget (leave headroom for compiler temporaries).
    budget = min(int(vmem * 3 // 4), 48 * _MIB if gen == "v7x" else 96 * _MIB)

    # --- Row tile ---------------------------------------------------------
    tile_n = min(tn_target, _round_up(max(n, 1), 8))
    # Ragged-N: if padding would exceed ~25% of the real rows, shrink the tile.
    while tile_n > 8 and (_round_up(n, tile_n) - n) * 4 > max(n, 1):
        tile_n = max(8, _round_up(tile_n // 2, 8))
    # v7x has 2 TensorCores: ensure the "parallel" row axis has >= 2 tiles.
    if n_cores > 1:
        while tile_n > 8 and _round_up(n, tile_n) // tile_n < n_cores:
            tile_n = max(8, _round_up(tile_n // 2, 8))

    # x is single-buffered on v7x (its block index only changes on the outer
    # row axis, so double-buffering it across the inner h loop buys nothing).
    single_io = gen == "v7x"

    # --- Hidden tile (budget-driven) ---------------------------------------
    h128 = _round_up(hidden, 128)
    # Keep W1 column-slab DMA chunks >= 512 B per row for HBM efficiency.
    min_th = min(h128, max(128, 512 // w_it))

    def ws_bytes(tn, th):
        io_buf = 1 if single_io else 2
        ws = 2 * d * th * w_it          # W1 slab (double-buffered)
        ws += 2 * th * d * w_it         # W2 slab (double-buffered)
        ws += 2 * th * b_it + 2 * d * b_it   # b1 slab, b2
        ws += io_buf * tn * d * x_it    # x rows
        ws += 2 * tn * d * out_it       # out rows
        if use_scratch:
            ws += tn * d * 4            # f32 accumulator scratch
        return ws

    tile_h = max(min_th, _round_down(min(th_target, h128), 128))
    # Shrink tile_h first (it does not affect weight-traffic intensity),
    # then tile_n, until the working set fits the budget.
    while ws_bytes(tile_n, tile_h) > budget and tile_h - 128 >= min_th:
        tile_h -= 128
    while ws_bytes(tile_n, tile_h) > budget and tile_n > 8:
        tile_n = max(8, _round_up(tile_n // 2, 8))

    n_pad = _round_up(n, tile_n)
    h_pad = _round_up(hidden, tile_h)
    return tile_n, tile_h, n_pad, h_pad, single_io, ws_bytes(tile_n, tile_h), vmem


# --------------------------------------------------------------------------
# pallas_call wrapper
# --------------------------------------------------------------------------
@functools.partial(jax.jit, static_argnames=(
    "out_dtype", "tile_n", "tile_h", "single_io", "approximate", "vmem_limit"))
def _mlp_call(x2, w1, b1, w2, b2, *, out_dtype, tile_n, tile_h, single_io,
              approximate, vmem_limit):
    n_pad, d = x2.shape
    hidden = w1.shape[1]
    grid = (n_pad // tile_n, hidden // tile_h)
    n_row_tiles = grid[0]

    if jnp.dtype(out_dtype) == jnp.dtype(jnp.float32):
        kernel = functools.partial(_mlp_kernel_accum_out,
                                   approximate=approximate)
        scratch_shapes = []
    else:
        kernel = functools.partial(_mlp_kernel_scratch,
                                   approximate=approximate)
        scratch_shapes = [pltpu.VMEM((tile_n, d), jnp.float32)]

    if single_io:
        # v7x: single-buffer x (index only changes on the outer row axis).
        x_spec = pl.BlockSpec((tile_n, d), lambda i, h: (i, 0),
                              pipeline_mode=pl.Buffered(1))
    else:
        x_spec = pl.BlockSpec((tile_n, d), lambda i, h: (i, 0))

    bytes_accessed = int(
        n_row_tiles * (w1.size * w1.dtype.itemsize        # weights re-streamed
                       + w2.size * w2.dtype.itemsize)      # once per row tile
        + x2.size * x2.dtype.itemsize
        + b1.size * b1.dtype.itemsize + b2.size * b2.dtype.itemsize
        + n_pad * d * jnp.dtype(out_dtype).itemsize)
    cost = pl.CostEstimate(
        flops=4 * n_pad * d * hidden,          # two (N, D, H) matmuls
        transcendentals=n_pad * hidden,        # erf/tanh per hidden activation
        bytes_accessed=bytes_accessed,
    )

    return pl.pallas_call(
        kernel,
        out_shape=jax.ShapeDtypeStruct((n_pad, d), out_dtype),
        grid_spec=pltpu.PrefetchScalarGridSpec(
            num_scalar_prefetch=0,
            grid=grid,
            in_specs=[
                x_spec,                                            # x rows
                pl.BlockSpec((d, tile_h), lambda i, h: (0, h)),    # W1 slab
                pl.BlockSpec((1, tile_h), lambda i, h: (0, h)),    # b1 slab
                pl.BlockSpec((tile_h, d), lambda i, h: (h, 0)),    # W2 slab
                pl.BlockSpec((1, d), lambda i, h: (0, 0)),         # b2
            ],
            out_specs=pl.BlockSpec((tile_n, d), lambda i, h: (i, 0)),
            scratch_shapes=scratch_shapes,
        ),
        compiler_params=pltpu.CompilerParams(
            dimension_semantics=("parallel", "arbitrary"),
            vmem_limit_bytes=vmem_limit,
        ),
        cost_estimate=cost,
    )(x2, w1, b1, w2, b2)


def mlp_forward(x, w1, b1, w2, b2, *, mxu_dtype=None, approximate_gelu=False):
    """x: (..., D). Applies Linear(D, 4D) -> GELU -> Linear(4D, D) on last dim.

    mxu_dtype: optionally cast x/W1/W2 (e.g. to jnp.bfloat16) before feeding
      the MXU — halves weight DMA bytes; accumulation stays f32 and the output
      keeps x.dtype.  Opt-in because it slightly changes numerics.
    approximate_gelu: use tanh-approx GELU (EUP) instead of exact erf GELU.
    """
    orig_shape = x.shape
    out_dtype = x.dtype
    d = orig_shape[-1]
    hidden = w1.shape[1]
    x2 = x.reshape(-1, d)
    n = x2.shape[0]

    if mxu_dtype is not None:
        x2 = x2.astype(mxu_dtype)
        w1 = w1.astype(mxu_dtype)
        w2 = w2.astype(mxu_dtype)

    x_it = jnp.dtype(x2.dtype).itemsize
    w_it = jnp.dtype(w1.dtype).itemsize
    b_it = jnp.dtype(b1.dtype).itemsize
    out_it = jnp.dtype(out_dtype).itemsize
    use_scratch = jnp.dtype(out_dtype) != jnp.dtype(jnp.float32)

    (tile_n, tile_h, n_pad, h_pad, single_io, ws, vmem_phys) = _select_tiles(
        n, d, hidden, x_it, w_it, b_it, out_it, use_scratch)

    if n_pad != n:
        x2 = jnp.pad(x2, ((0, n_pad - n), (0, 0)))
    if h_pad != hidden:
        # Zero-pad the hidden dim: GELU(0 + 0) = 0 and the padded W2 rows are
        # zero, so the extra hidden columns are numerically inert.
        w1 = jnp.pad(w1, ((0, 0), (0, h_pad - hidden)))
        b1 = jnp.pad(b1, ((0, 0), (0, h_pad - hidden)))
        w2 = jnp.pad(w2, ((0, h_pad - hidden), (0, 0)))

    vmem_limit = int(min(ws + max(ws // 2, 16 * _MIB), vmem_phys - 4 * _MIB))
    vmem_limit = max(vmem_limit, 16 * _MIB)

    out2 = _mlp_call(x2, w1, b1, w2, b2,
                     out_dtype=out_dtype, tile_n=tile_n, tile_h=tile_h,
                     single_io=single_io, approximate=approximate_gelu,
                     vmem_limit=vmem_limit)
    if n_pad != n:
        out2 = out2[:n]
    return out2.reshape(orig_shape)


def init_mlp_params(key, embed_dim, dtype=jnp.float32):
    """Deterministic init matching PyTorch nn.Linear shapes.
    Weights are stored pre-transposed as (in, out)."""
    hidden = 4 * embed_dim
    k1, k2, k3, k4 = jax.random.split(key, 4)
    bound1 = 1.0 / math.sqrt(embed_dim)
    bound2 = 1.0 / math.sqrt(hidden)
    w1 = jax.random.uniform(k1, (embed_dim, hidden), dtype, -bound1, bound1)
    b1 = jax.random.uniform(k2, (1, hidden), dtype, -bound1, bound1)
    w2 = jax.random.uniform(k3, (hidden, embed_dim), dtype, -bound2, bound2)
    b2 = jax.random.uniform(k4, (1, embed_dim), dtype, -bound2, bound2)
    return w1, b1, w2, b2


if __name__ == "__main__":
    embed_dim = 32            # hidden = 128
    batch, seq = 2, 8         # N = 16 rows

    key = jax.random.PRNGKey(0)
    kx, kp = jax.random.split(key)

    x = jax.random.normal(kx, (batch, seq, embed_dim), dtype=jnp.float32)
    w1, b1, w2, b2 = init_mlp_params(kp, embed_dim)

    # Pure-JAX reference (same math as nn.Sequential(Linear, GELU, Linear)).
    ref = jnp.einsum("bsd,dh->bsh", x, w1) + b1.reshape(1, 1, -1)
    ref = 0.5 * ref * (1.0 + jax.lax.erf(ref * _INV_SQRT2))
    ref = jnp.einsum("bsh,hd->bsd", ref, w2) + b2.reshape(1, 1, -1)

    # Default path: f32 operands, exact erf GELU (matches torch.nn.GELU()).
    out = jax.block_until_ready(mlp_forward(x, w1, b1, w2, b2))
    assert out.shape == (batch, seq, embed_dim)
    assert jnp.allclose(out, ref, atol=1e-5, rtol=1e-5), (
        float(jnp.max(jnp.abs(out - ref))))

    # Perf path: bf16 MXU operands (halves weight DMA); looser tolerance.
    out_bf16 = jax.block_until_ready(
        mlp_forward(x, w1, b1, w2, b2, mxu_dtype=jnp.bfloat16))
    assert out_bf16.dtype == x.dtype
    assert jnp.allclose(out_bf16, ref, atol=5e-2, rtol=5e-2), (
        float(jnp.max(jnp.abs(out_bf16 - ref))))

    print("KERNEL_OK")
</pallas_src>

<mosaic_0001>
module attributes {stable_mosaic.version = 11 : i64} {
  func.func @_mlp_kernel_accum_out(%arg0: i32, %arg1: i32, %arg2: memref<16x32xf32, #tpu.memory_space<vmem>>, %arg3: memref<32x128xf32, #tpu.memory_space<vmem>>, %arg4: memref<1x128xf32, #tpu.memory_space<vmem>>, %arg5: memref<128x32xf32, #tpu.memory_space<vmem>>, %arg6: memref<1x32xf32, #tpu.memory_space<vmem>>, %arg7: memref<16x32xf32, #tpu.memory_space<vmem>>) attributes {dimension_semantics = [#tpu.dimension_semantics<parallel>, #tpu.dimension_semantics<arbitrary>], iteration_bounds = array<i64: 1, 1>, scalar_prefetch = 0 : i64, scratch_operands = 0 : i64, tpu.core_type = #tpu.core_type<tc>, window_params = [{transform_indices = @transform_0, window_bounds = array<i64: 16, 32>}, {transform_indices = @transform_1, window_bounds = array<i64: 32, 128>}, {transform_indices = @transform_2, window_bounds = array<i64: 1, 128>}, {transform_indices = @transform_3, window_bounds = array<i64: 128, 32>}, {pipeline_mode = #tpu.pipeline_mode<synchronous>, transform_indices = @transform_4, window_bounds = array<i64: 1, 32>}, {transform_indices = @transform_5, window_bounds = array<i64: 16, 32>}]} {
    %c0_i32 = arith.constant 0 : i32
    %0 = arith.cmpi eq, %arg1, %c0_i32 : i32
    %1 = arith.extui %0 : i1 to i32
    %c0_i32_0 = arith.constant 0 : i32
    %2 = arith.cmpi ne, %1, %c0_i32_0 : i32
    scf.if %2 {
      %cst_18 = arith.constant 0.000000e+00 : f32
      %25 = vector.broadcast %cst_18 : f32 to vector<16x32xf32>
      %c0_19 = arith.constant 0 : index
      %c0_20 = arith.constant 0 : index
      %26 = vector.load %arg7[%c0_19, %c0_20] : memref<16x32xf32, #tpu.memory_space<vmem>>, vector<16x32xf32>
      tpu.vector_store %arg7[%c0_19, %c0_20], %25 {strides = array<i32>} : memref<16x32xf32, #tpu.memory_space<vmem>>, vector<16x32xf32>,
    } else {
    }
    %c0 = arith.constant 0 : index
    %c0_1 = arith.constant 0 : index
    %3 = vector.load %arg2[%c0, %c0_1] : memref<16x32xf32, #tpu.memory_space<vmem>>, vector<16x32xf32>
    %c0_2 = arith.constant 0 : index
    %c0_3 = arith.constant 0 : index
    %4 = vector.load %arg3[%c0_2, %c0_3] : memref<32x128xf32, #tpu.memory_space<vmem>>, vector<32x128xf32>
    %cst = arith.constant dense<0.000000e+00> : vector<16x128xf32>
    %5 = tpu.matmul %3, %4, %cst {dimension_numbers = #tpu.dot_dimension_numbers<[1], [0], [0], [1], [0, 0, 1, 1], [], []>} : vector<16x32xf32>, vector<32x128xf32>, vector<16x128xf32> -> vector<16x128xf32>
    %c0_4 = arith.constant 0 : index
    %c0_5 = arith.constant 0 : index
    %6 = vector.load %arg4[%c0_4, %c0_5] : memref<1x128xf32, #tpu.memory_space<vmem>>, vector<1x128xf32>
    %7 = vector.broadcast %6 : vector<1x128xf32> to vector<16x128xf32>
    %8 = arith.addf %5, %7 : vector<16x128xf32>
    %cst_6 = arith.constant 5.000000e-01 : f32
    %9 = vector.broadcast %cst_6 : f32 to vector<16x128xf32>
    %10 = arith.mulf %9, %8 : vector<16x128xf32>
    %cst_7 = arith.constant 0.707106769 : f32
    %11 = vector.broadcast %cst_7 : f32 to vector<16x128xf32>
    %12 = arith.mulf %8, %11 : vector<16x128xf32>
    %13 = math.erf %12 : vector<16x128xf32>
    %cst_8 = arith.constant 1.000000e+00 : f32
    %14 = vector.broadcast %cst_8 : f32 to vector<16x128xf32>
    %15 = arith.addf %14, %13 : vector<16x128xf32>
    %16 = arith.mulf %10, %15 : vector<16x128xf32>
    %c0_9 = arith.constant 0 : index
    %c0_10 = arith.constant 0 : index
    %17 = vector.load %arg7[%c0_9, %c0_10] : memref<16x32xf32, #tpu.memory_space<vmem>>, vector<16x32xf32>
    %c0_11 = arith.constant 0 : index
    %c0_12 = arith.constant 0 : index
    %18 = vector.load %arg5[%c0_11, %c0_12] : memref<128x32xf32, #tpu.memory_space<vmem>>, vector<128x32xf32>
    %cst_13 = arith.constant dense<0.000000e+00> : vector<16x32xf32>
    %19 = tpu.matmul %16, %18, %cst_13 {dimension_numbers = #tpu.dot_dimension_numbers<[1], [0], [0], [1], [0, 0, 1, 1], [], []>} : vector<16x128xf32>, vector<128x32xf32>, vector<16x32xf32> -> vector<16x32xf32>
    %20 = arith.addf %17, %19 : vector<16x32xf32>
    %c0_14 = arith.constant 0 : index
    %c0_15 = arith.constant 0 : index
    %21 = vector.load %arg7[%c0_14, %c0_15] : memref<16x32xf32, #tpu.memory_space<vmem>>, vector<16x32xf32>
    tpu.vector_store %arg7[%c0_14, %c0_15], %20 {strides = array<i32>} : memref<16x32xf32, #tpu.memory_space<vmem>>, vector<16x32xf32>,
    %c0_i32_16 = arith.constant 0 : i32
    %22 = arith.cmpi eq, %arg1, %c0_i32_16 : i32
    %23 = arith.extui %22 : i1 to i32
    %c0_i32_17 = arith.constant 0 : i32
    %24 = arith.cmpi ne, %23, %c0_i32_17 : i32
    scf.if %24 {
      %c0_18 = arith.constant 0 : index
      %c0_19 = arith.constant 0 : index
      %25 = vector.load %arg7[%c0_18, %c0_19] : memref<16x32xf32, #tpu.memory_space<vmem>>, vector<16x32xf32>
      %c0_20 = arith.constant 0 : index
      %c0_21 = arith.constant 0 : index
      %26 = vector.load %arg6[%c0_20, %c0_21] : memref<1x32xf32, #tpu.memory_space<vmem>>, vector<1x32xf32>
      %27 = vector.broadcast %26 : vector<1x32xf32> to vector<16x32xf32>
      %28 = arith.addf %25, %27 : vector<16x32xf32>
      %c0_22 = arith.constant 0 : index
      %c0_23 = arith.constant 0 : index
      %29 = vector.load %arg7[%c0_22, %c0_23] : memref<16x32xf32, #tpu.memory_space<vmem>>, vector<16x32xf32>
      tpu.vector_store %arg7[%c0_22, %c0_23], %28 {strides = array<i32>} : memref<16x32xf32, #tpu.memory_space<vmem>>, vector<16x32xf32>,
    } else {
    }
    return
  }
  func.func @transform_0(%arg0: i32, %arg1: i32) -> (i32, i32) {
    %c0_i32 = arith.constant 0 : i32
    %c0_i32_0 = arith.constant 0 : i32
    return %arg0, %c0_i32 : i32, i32
  }
  func.func @transform_1(%arg0: i32, %arg1: i32) -> (i32, i32) {
    %c0_i32 = arith.constant 0 : i32
    %c0_i32_0 = arith.constant 0 : i32
    return %c0_i32, %arg1 : i32, i32
  }
  func.func @transform_2(%arg0: i32, %arg1: i32) -> (i32, i32) {
    %c0_i32 = arith.constant 0 : i32
    %c0_i32_0 = arith.constant 0 : i32
    return %c0_i32, %arg1 : i32, i32
  }
  func.func @transform_3(%arg0: i32, %arg1: i32) -> (i32, i32) {
    %c0_i32 = arith.constant 0 : i32
    %c0_i32_0 = arith.constant 0 : i32
    return %arg1, %c0_i32 : i32, i32
  }
  func.func @transform_4(%arg0: i32, %arg1: i32) -> (i32, i32) {
    %c0_i32 = arith.constant 0 : i32
    %c0_i32_0 = arith.constant 0 : i32
    %c0_i32_1 = arith.constant 0 : i32
    return %c0_i32, %c0_i32_0 : i32, i32
  }
  func.func @transform_5(%arg0: i32, %arg1: i32) -> (i32, i32) {
    %c0_i32 = arith.constant 0 : i32
    %c0_i32_0 = arith.constant 0 : i32
    return %arg0, %c0_i32 : i32, i32
  }
}

</mosaic_0001>

<bundles_post_ra>
// kernel: _mlp_call.1
= control target key start
LH: loop header
LB: loop body
LE: loop exit
PB: predicated region body
PF: predicated region fallthrough
CT: control target
= control target key end

     0   :  { %vm25_vm0 = vcmask 261120   ;;  %s534_s0 = inlined_call_operand.vmem [shape: f32[16,32], index: 0, kind: input, shape index: {}]   ;;  %s535_s1 = inlined_call_operand.vmem [shape: f32[32,128], index: 1, kind: input, shape index: {}]   ;;  %s536_s2 = inlined_call_operand.vmem [shape: f32[1,128], index: 2, kind: input, shape index: {}]   ;;  %s537_s3 = inlined_call_operand.vmem [shape: f32[128,32], index: 3, kind: input, shape index: {}]   ;;  %s538_s4 = inlined_call_operand.vmem [shape: f32[1,32], index: 4, kind: input, shape index: {}]   ;;  %s539_s5 = inlined_call_operand.hbm [shape: f32[16,32], index: 5, kind: output, shape index: {}]  }
   0x1   :  { %v30_v0 = vld [vmem:[%s535_s1] sm:$0xff]  ;;  %v31_v1 = vld [vmem:[%s535_s1 + $0x8] sm:$0xff]  ;;  %v32_v2 = vld [vmem:[%s535_s1 + $0x10] sm:$0xff] }
   0x2   :  { %v336_v3 = vpack.c.bf16 %v31_v1, %v30_v0  ;;  %v33_v4 = vld [vmem:[%s535_s1 + $0x18] sm:$0xff]  ;;  %v28_v5 = vld [vmem:[%s534_s0] sm:$0xff]  ;;  %v136_v8 = vld [vmem:[%s537_s3 + $0x8] sm:$0xff] }
   0x3   :  { %v340_v6 = vpack.c.bf16 %v33_v4, %v32_v2  ;;  %298 = vmatprep.mubr.msk.f32.mxu0 %vm25_vm0, %v28_v5  ;;  %v135_v7 = vld [vmem:[%s537_s3] sm:$0xff]  ;;  %v137_v9 = vld [vmem:[%s537_s3 + $0x10] sm:$0xff]  ;;  %v138_v11 = vld [vmem:[%s537_s3 + $0x18] sm:$0xff] }
   0x4   :  { %337 = vmatprep.subr.bf16.mxu0 %v336_v3  ;;  %v344_v10 = vpack.c.bf16 %v136_v8, %v135_v7  ;;  %v348_v12 = vpack.c.bf16 %v138_v11, %v137_v9  ;;  %v139_v13 = vld [vmem:[%s537_s3 + $0x20] sm:$0xff]  ;;  %v140_v14 = vld [vmem:[%s537_s3 + $0x28] sm:$0xff] }
   0x5   :  { %339 = vmatpush3.bf16.msra.mxu0 %v336_v3 }
   0x6   :  { %10 = vsyncpa [#allocation3], 0  ;;  %341 = vmatprep.subr.bf16.mxu0 %v340_v6  ;;  %345 = vmatprep.subr.bf16.mxu1 %v344_v10  ;;  %v352_v15 = vpack.c.bf16 %v140_v14, %v139_v13  ;;  %v29_v16 = vld [vmem:[%s534_s0 + $0x8] sm:$0xff]  ;;  %v141_v17 = vld [vmem:[%s537_s3 + $0x30] sm:$0xff]  ;;  %v408_v32 = vmov 0.0   ;;  %s409_s11 = smov [#allocation2]  }
   0x7   :  { %347 = vmatpush3.bf16.msra.mxu1 %v344_v10  ;;  %v142_v18 = vld [vmem:[%s537_s3 + $0x38] sm:$0xff]  ;;  %v143_v20 = vld [vmem:[%s537_s3 + $0x40] sm:$0xff]  ;;  %v144_v21 = vld [vmem:[%s537_s3 + $0x48] sm:$0xff]  ;;  %27 = vst.msk [vmem:[#allocation2 + $0x8] sm:$0xff] %vm25_vm0, %v408_v32  ;;  %s251_s12 = sshll.u32 %s409_s11, 4  ;;  %s252_s12 = int_to_ptr.vmem [resolvable:$true] %s251_s12 }
   0x8   :  { %349 = vmatprep.subr.bf16.mxu1 %v348_v12  ;;  %v356_v19 = vpack.c.bf16 %v142_v18, %v141_v17  ;;  %v360_v22 = vpack.c.bf16 %v144_v21, %v143_v20  ;;  %v145_v23 = vld [vmem:[%s537_s3 + $0x50] sm:$0xff]  ;;  %v146_v24 = vld [vmem:[%s537_s3 + $0x58] sm:$0xff]  ;;  %v147_v26 = vld [vmem:[%s537_s3 + $0x60] sm:$0xff]  ;;  %26 = vst.msk [vmem:[#allocation2] sm:$0xff] %vm25_vm0, %v408_v32  ;;  %s384_s13 = scalar_lea.vmem %s252_s12, 256  ;;  %p389_p1 = scmp.lt.s32.totalorder %s252_s12, %s252_s12 }
   0x9   :  { %343 = vmatpush3.bf16.msra.mxu0 %v340_v6  ;;  %v364_v25 = vpack.c.bf16 %v146_v24, %v145_v23  ;;  %v148_v27 = vld [vmem:[%s537_s3 + $0x68] sm:$0xff]  ;;  %v149_v29 = vld [vmem:[%s537_s3 + $0x70] sm:$0xff]  ;;  %v150_v30 = vld [vmem:[%s537_s3 + $0x78] sm:$0xff]  ;;  %p385_p0 = scmp.ne.s32.totalorder %s252_s12, %s384_s13  ;;  %p390_p2 = scmp.lt.s32.totalorder %s384_s13, %s384_s13 }
   0xa   :  { %v368_v28 = vpack.c.bf16 %v148_v27, %v147_v26  ;;  %v372_v31 = vpack.c.bf16 %v150_v30, %v149_v29  ;;  %v262_v33 = vld [vmem:[%s536_s2] ss:$0 sm:$0xff] }
   0xb   :  { %351 = vmatpush3.bf16.msra.mxu1 %v348_v12  ;;  %v265_v54 = vld [vmem:[%s538_s4] ss:$0 sm:$0xff]  ;;  %p391_p3 = por %p390_p2, %p389_p1 }
   0xc   :  { %299 = vmatmul.mubr.msk.f32.vlgmr.msra.gmra.mrb[0].mxu0 %vm25_vm0, %v29_v16  ;;  %353 = vmatprep.subr.bf16.mxu1 %v352_v15 }
   0xd   :  { %p392_p4 = pnand %p391_p3, %p385_p0 }
   0xe   :  { %v134_v48 = vld [vmem:[#allocation2 + $0x8] sm:$0xff] }
   0xf   :  { %355 = vmatpush3.bf16.msra.mxu1 %v352_v15  ;;  %v133_v49 = vld [vmem:[#allocation2] sm:$0xff] }
  0x10   :  { %357 = vmatprep.subr.bf16.mxu1 %v356_v19 }
  0x13   :  { %359 = vmatpush3.bf16.msra.mxu1 %v356_v19 }
  0x14   :  { %361 = vmatprep.subr.bf16.mxu1 %v360_v22 }
  0x17   :  { %363 = vmatpush3.bf16.msra.mxu1 %v360_v22 }
  0x18   :  { %365 = vmatprep.subr.bf16.mxu1 %v364_v25 }
  0x1b   :  { %367 = vmatpush3.bf16.msra.mxu1 %v364_v25 }
  0x1c   :  { %369 = vmatprep.subr.bf16.mxu1 %v368_v28 }
  0x1f   :  { %371 = vmatpush3.bf16.msra.mxu1 %v368_v28 }
  0x20   :  { %373 = vmatprep.subr.bf16.mxu1 %v372_v31 }
  0x23   :  { %375 = vmatpush3.bf16.msra.mxu1 %v372_v31 }
  0xdf   :  { %v300_v34 = vpop.f32.mrb[0].mxu0 }
  0xe0   :  { %v120_v35 = vadd.f32 %v300_v34, %v262_v33  ;;  %v114_v36 = vpop.f32.mrb[1].mxu0 }
  0xe1   :  { %v115_v37 = vadd.f32 %v262_v33, %v114_v36 }
  0xe2   :  { %v126_v38 = vmul.f32 0.70710677, %v120_v35  ;;  %v124_v45 = vmul.f32 0.5, %v120_v35 }
  0xe3   :  { %v125_v39 = vmul.f32 0.70710677, %v115_v37  ;;  %v123_v43 = vmul.f32 0.5, %v115_v37 }
  0xe4   :  { %380 = verf.f32 %v126_v38 }
  0xe5   :  { %382 = verf.f32 %v125_v39 }
  0xee   :  { %v381_v40 = vpop.eup %380 }
  0xef   :  { %v383_v41 = vpop.eup %382  ;;  %v130_v42 = vadd.f32 1.0, %v381_v40 }
  0xf0   :  { %v129_v44 = vadd.f32 1.0, %v383_v41 }
  0xf1   :  { %v132_v47 = vmul.f32 %v130_v42, %v124_v45 }
  0xf2   :  { %v131_v46 = vmul.f32 %v129_v44, %v123_v43 }
  0xf4   :  { %333 = vmatprep.mubr.f32.mxu1 %v131_v46 }
  0xf5   :  { %334 = vmatmul.mubr.f32.vlgmr.msra.gmra.mrb[0].mxu1 %v132_v47 }
 0x1c8   :  { %v335_v50 = vpop.f32.mrb[0].mxu1 }
 0x1c9   :  { %v227_v51 = vadd.f32 %v335_v50, %v134_v48  ;;  %v217_v52 = vpop.f32.mrb[1].mxu1 }
 0x1ca   :  { %v226_v53 = vadd.f32 %v217_v52, %v133_v49 }
 0x1cb   :  { %229 = vst.msk [vmem:[#allocation2 + $0x8] sm:$0xff] %vm25_vm0, %v227_v51 }
 0x1cc   :  { %228 = vst.msk [vmem:[#allocation2] sm:$0xff] %vm25_vm0, %v226_v53 }
 0x1d2   :  { %v234_v55 = vld [vmem:[#allocation2 + $0x8] sm:$0xff] }
 0x1d3   :  { %v233_v56 = vld [vmem:[#allocation2] sm:$0xff]  ;;  %v243_v57 = vadd.f32 %v265_v54, %v234_v55 }
 0x1d4   :  { %v242_v58 = vadd.f32 %v265_v54, %v233_v56 }
 0x1d5   :  { %245 = vst.msk [vmem:[#allocation2 + $0x8] sm:$0xff] %vm25_vm0, %v243_v57 }
 0x1d6   :  { %244 = vst.msk [vmem:[#allocation2] sm:$0xff] %vm25_vm0, %v242_v58 }
 0x1d7   :  { %395 = shalt.err (!%p392_p4)
}
 0x1d8   :  { %s396_s15 = scalar_lea.hbm %s539_s5, 256 }
 0x1d9   :  { %p397_p5 = scmp.ne.s32.totalorder %s539_s5, %s396_s15  ;;  %p400_p6 = scmp.lt.u32.totalorder %s396_s15, %s539_s5 }
 0x1db   :  { %p402_p7 = pnand %p400_p6, %p397_p5 }
 0x1dd   :  { %405 = shalt.err (!%p402_p7)
}
 0x1de   :  { %s410_s20 = smov 128   ;;  %s411_s21 = smov 8  }
 0x1df   :  { %257 = dma.vmem_to_hbm [thread:$0]  %s252_s12, 256, %s539_s5, [#allocation3], %s410_s20, %s410_s20, %s411_s21  }
 0x1e0   :  { %406 = dma.done.wait [#allocation3], 256  }
 0x1e1   :  { %407 = vsyncadd [#allocation3], 4294967040 }
 0x1e2   :  { %261 = vsyncpa [#allocation3], 1 }

</bundles_post_ra>
